<compile_context>
chip_gen: v7x
topology: tpu7x:2x2x1
jax: 0.10.0
libtpu: 0.0.40
codegen_flags: <defaults>
</compile_context>

<pallas_src>
import functools

import jax
import jax.numpy as jnp
from jax.experimental import pallas as pl
from jax.experimental.pallas import tpu as pltpu

IN_DIM = 512    # feature dim of x / columns of y
HID_DIM = 16    # true hidden dim (encoder columns)
HID_PAD = 128   # lane-aligned padded hidden dim used for the z->y contraction


def _encdec_kernel(x_ref, enc_ref, dec_ref, z_ref, y_ref):
    # Serial z -> y on the single MXU.  Padded columns of enc / rows of dec
    # are exact zeros, so the padded contraction is bit-for-bit equivalent to
    # the unpadded one (modulo adding exact zeros to the accumulator).
    x = x_ref[...]
    zp = jnp.dot(x, enc_ref[...], preferred_element_type=jnp.float32)   # (tm, 128)
    z_ref[...] = zp[:, :HID_DIM].astype(z_ref.dtype)                    # (tm, 16)
    y_ref[...] = jnp.dot(zp, dec_ref[...],
                         preferred_element_type=jnp.float32).astype(y_ref.dtype)


def _round_up(n, m):
    return pl.cdiv(n, m) * m


@functools.partial(jax.jit, static_argnames=("tile_m",))
def encoder_decoder(x, w_enc, w_dec, *, tile_m=2048):
    """Pallas implementation of EncoderDecoder.forward.

    x: (N, 512) float32
    returns (z, y) with z: (N, 16), y: (N, 512)
    """
    N, K = x.shape
    assert K == IN_DIM and w_enc.shape == (IN_DIM, HID_DIM)
    assert w_dec.shape == (HID_DIM, IN_DIM)

    # --- batch tiling ---------------------------------------------------
    # Clamp the tile so the grid has >=2 steps whenever possible (v7x has
    # 2 TensorCores; the "parallel" axis only shards across them if the grid
    # has more than one step).  Ragged last tile is handled by Pallas output
    # masking — no pad/slice round-trips in the wrapper.
    half = int(_round_up(pl.cdiv(N, 2), 8))
    tm = max(8, min(int(tile_m), half))
    tm = int(_round_up(tm, 8))
    grid = (int(pl.cdiv(N, tm)),)

    # --- weight preprocessing (tiny, one-time) ---------------------------
    w_enc_pad = jnp.pad(w_enc, ((0, 0), (0, HID_PAD - HID_DIM)))   # (512, 128)
    w_dec_pad = jnp.pad(w_dec, ((0, HID_PAD - HID_DIM), (0, 0)))   # (128, 512)

    # --- VMEM budget / cost hint -----------------------------------------
    bpe = 4  # f32
    vmem_bytes = (
        2 * (tm * IN_DIM + tm * HID_DIM + tm * IN_DIM) * bpe       # x, z, y tiles (double-buffered)
        + 2 * (IN_DIM * HID_PAD + HID_PAD * IN_DIM) * bpe          # resident weights
        + tm * HID_PAD * bpe                                       # zp intermediate
    )
    vmem_limit = int(min(max(int(vmem_bytes * 1.5), 16 << 20), 32 << 20))

    cost = pl.CostEstimate(
        flops=4 * N * IN_DIM * HID_DIM,          # 2*N*512*16 (z) + 2*N*16*512 (y)
        transcendentals=0,
        bytes_accessed=bpe
        * (
            N * IN_DIM                # x in
            + N * HID_DIM             # z out
            + N * IN_DIM              # y out
            + IN_DIM * HID_DIM        # encoder
            + HID_DIM * IN_DIM        # decoder
        ),
    )

    z, y = pl.pallas_call(
        _encdec_kernel,
        out_shape=(
            jax.ShapeDtypeStruct((N, HID_DIM), x.dtype),
            jax.ShapeDtypeStruct((N, IN_DIM), x.dtype),
        ),
        grid_spec=pltpu.PrefetchScalarGridSpec(
            num_scalar_prefetch=0,
            grid=grid,
            in_specs=[
                pl.BlockSpec((tm, IN_DIM), lambda i: (i, 0)),        # x tile
                pl.BlockSpec((IN_DIM, HID_PAD), lambda i: (0, 0)),   # encoder (padded, resident)
                pl.BlockSpec((HID_PAD, IN_DIM), lambda i: (0, 0)),   # decoder (padded, resident)
            ],
            out_specs=[
                pl.BlockSpec((tm, HID_DIM), lambda i: (i, 0)),       # z tile (width 16 = full dim)
                pl.BlockSpec((tm, IN_DIM), lambda i: (i, 0)),        # y tile
            ],
        ),
        compiler_params=pltpu.CompilerParams(
            dimension_semantics=("parallel",),
            vmem_limit_bytes=vmem_limit,
        ),
        cost_estimate=cost,
    )(x, w_enc_pad, w_dec_pad)

    return z, y


if __name__ == "__main__":
    key = jax.random.PRNGKey(0)
    k_x, k_enc, k_dec, k_x2 = jax.random.split(key, 4)

    # Deterministic "parameters" (matching torch.randn shapes in __init__).
    w_enc = jax.random.normal(k_enc, (IN_DIM, HID_DIM), dtype=jnp.float32)
    w_dec = jax.random.normal(k_dec, (HID_DIM, IN_DIM), dtype=jnp.float32)

    # Small example input: batch of 8 feature vectors of dim 512.
    x = jax.random.normal(k_x, (8, IN_DIM), dtype=jnp.float32)

    z, y = encoder_decoder(x, w_enc, w_dec)
    jax.block_until_ready((z, y))

    z_ref = x @ w_enc
    y_ref = z_ref @ w_dec
    assert z.shape == (8, HID_DIM) and y.shape == (8, IN_DIM)
    assert jnp.allclose(z, z_ref, atol=1e-4, rtol=1e-4)
    assert jnp.allclose(y, y_ref, atol=1e-3, rtol=1e-3)

    # Exercise the ragged-batch / multi-tile / partial-last-tile path.
    x2 = jax.random.normal(k_x2, (300, IN_DIM), dtype=jnp.float32)
    z2, y2 = encoder_decoder(x2, w_enc, w_dec, tile_m=128)
    jax.block_until_ready((z2, y2))
    z2_ref = x2 @ w_enc
    y2_ref = z2_ref @ w_dec
    assert z2.shape == (300, HID_DIM) and y2.shape == (300, IN_DIM)
    assert jnp.allclose(z2, z2_ref, atol=1e-4, rtol=1e-4)
    assert jnp.allclose(y2, y2_ref, atol=1e-3, rtol=1e-3)

    print("KERNEL_OK")
</pallas_src>

<mosaic_0001>
module attributes {stable_mosaic.version = 11 : i64} {
  func.func @_encdec_kernel(%arg0: i32, %arg1: memref<8x512xf32, #tpu.memory_space<vmem>>, %arg2: memref<512x128xf32, #tpu.memory_space<vmem>>, %arg3: memref<128x512xf32, #tpu.memory_space<vmem>>, %arg4: memref<8x16xf32, #tpu.memory_space<vmem>>, %arg5: memref<8x512xf32, #tpu.memory_space<vmem>>) attributes {dimension_semantics = [#tpu.dimension_semantics<parallel>], iteration_bounds = array<i64: 1>, scalar_prefetch = 0 : i64, scratch_operands = 0 : i64, tpu.core_type = #tpu.core_type<tc>, window_params = [{transform_indices = @transform_0, window_bounds = array<i64: 8, 512>}, {pipeline_mode = #tpu.pipeline_mode<synchronous>, transform_indices = @transform_1, window_bounds = array<i64: 512, 128>}, {pipeline_mode = #tpu.pipeline_mode<synchronous>, transform_indices = @transform_2, window_bounds = array<i64: 128, 512>}, {transform_indices = @transform_3, window_bounds = array<i64: 8, 16>}, {transform_indices = @transform_4, window_bounds = array<i64: 8, 512>}]} {
    %c0 = arith.constant 0 : index
    %c0_0 = arith.constant 0 : index
    %0 = vector.load %arg1[%c0, %c0_0] : memref<8x512xf32, #tpu.memory_space<vmem>>, vector<8x512xf32>
    %c0_1 = arith.constant 0 : index
    %c0_2 = arith.constant 0 : index
    %1 = vector.load %arg2[%c0_1, %c0_2] : memref<512x128xf32, #tpu.memory_space<vmem>>, vector<512x128xf32>
    %cst = arith.constant dense<0.000000e+00> : vector<8x128xf32>
    %2 = tpu.matmul %0, %1, %cst {dimension_numbers = #tpu.dot_dimension_numbers<[1], [0], [0], [1], [0, 0, 1, 1], [], []>} : vector<8x512xf32>, vector<512x128xf32>, vector<8x128xf32> -> vector<8x128xf32>
    %3 = vector.extract_strided_slice %2 {offsets = [0, 0], sizes = [8, 16], strides = [1, 1]} : vector<8x128xf32> to vector<8x16xf32>
    %c0_3 = arith.constant 0 : index
    %c0_4 = arith.constant 0 : index
    %4 = vector.load %arg4[%c0_3, %c0_4] : memref<8x16xf32, #tpu.memory_space<vmem>>, vector<8x16xf32>
    tpu.vector_store %arg4[%c0_3, %c0_4], %3 {strides = array<i32>} : memref<8x16xf32, #tpu.memory_space<vmem>>, vector<8x16xf32>,
    %c0_5 = arith.constant 0 : index
    %c0_6 = arith.constant 0 : index
    %5 = vector.load %arg3[%c0_5, %c0_6] : memref<128x512xf32, #tpu.memory_space<vmem>>, vector<128x512xf32>
    %cst_7 = arith.constant dense<0.000000e+00> : vector<8x512xf32>
    %6 = tpu.matmul %2, %5, %cst_7 {dimension_numbers = #tpu.dot_dimension_numbers<[1], [0], [0], [1], [0, 0, 1, 1], [], []>} : vector<8x128xf32>, vector<128x512xf32>, vector<8x512xf32> -> vector<8x512xf32>
    %c0_8 = arith.constant 0 : index
    %c0_9 = arith.constant 0 : index
    %7 = vector.load %arg5[%c0_8, %c0_9] : memref<8x512xf32, #tpu.memory_space<vmem>>, vector<8x512xf32>
    tpu.vector_store %arg5[%c0_8, %c0_9], %6 {strides = array<i32>} : memref<8x512xf32, #tpu.memory_space<vmem>>, vector<8x512xf32>,
    return
  }
  func.func @transform_0(%arg0: i32) -> (i32, i32) {
    %c0_i32 = arith.constant 0 : i32
    %c0_i32_0 = arith.constant 0 : i32
    return %arg0, %c0_i32 : i32, i32
  }
  func.func @transform_1(%arg0: i32) -> (i32, i32) {
    %c0_i32 = arith.constant 0 : i32
    %c0_i32_0 = arith.constant 0 : i32
    %c0_i32_1 = arith.constant 0 : i32
    return %c0_i32, %c0_i32_0 : i32, i32
  }
  func.func @transform_2(%arg0: i32) -> (i32, i32) {
    %c0_i32 = arith.constant 0 : i32
    %c0_i32_0 = arith.constant 0 : i32
    %c0_i32_1 = arith.constant 0 : i32
    return %c0_i32, %c0_i32_0 : i32, i32
  }
  func.func @transform_3(%arg0: i32) -> (i32, i32) {
    %c0_i32 = arith.constant 0 : i32
    %c0_i32_0 = arith.constant 0 : i32
    return %arg0, %c0_i32 : i32, i32
  }
  func.func @transform_4(%arg0: i32) -> (i32, i32) {
    %c0_i32 = arith.constant 0 : i32
    %c0_i32_0 = arith.constant 0 : i32
    return %arg0, %c0_i32 : i32, i32
  }
}

</mosaic_0001>

<bundles_post_ra>
// kernel: encoder_decoder.1
= control target key start
LH: loop header
LB: loop body
LE: loop exit
PB: predicated region body
PF: predicated region fallthrough
CT: control target
= control target key end

     0   :  { %10 = vsyncpa [#allocation3], 0  ;;  %s1163_s0 = inlined_call_operand.vmem [shape: f32[8,512], index: 0, kind: input, shape index: {}]   ;;  %s1164_s1 = inlined_call_operand.vmem [shape: f32[512,128], index: 1, kind: input, shape index: {}]   ;;  %s1165_s2 = inlined_call_operand.vmem [shape: f32[128,512], index: 2, kind: input, shape index: {}]   ;;  %s1166_s3 = inlined_call_operand.hbm [shape: f32[8,16], index: 3, kind: output, shape index: {0}]   ;;  %s1167_s4 = inlined_call_operand.hbm [shape: f32[8,512], index: 4, kind: output, shape index: {1}]  }
   0x1   :  { %v38_v0 = vld [vmem:[%s1164_s1 + $0x80] sm:$0xff]  ;;  %v39_v1 = vld [vmem:[%s1164_s1 + $0x88] sm:$0xff]  ;;  %v40_v11 = vld [vmem:[%s1164_s1 + $0x90] sm:$0xff] }
   0x2   :  { %v70_v2 = vld [vmem:[%s1164_s1 + $0x180] sm:$0xff]  ;;  %v536_v3 = vpack.c.bf16 %v39_v1, %v38_v0  ;;  %v71_v4 = vld [vmem:[%s1164_s1 + $0x188] sm:$0xff]  ;;  %v41_v13 = vld [vmem:[%s1164_s1 + $0x98] sm:$0xff] }
   0x3   :  { %v22_v5 = vld [vmem:[%s1164_s1] sm:$0xff]  ;;  %v23_v6 = vld [vmem:[%s1164_s1 + $0x8] sm:$0xff]  ;;  %v568_v7 = vpack.c.bf16 %v71_v4, %v70_v2  ;;  %v72_v14 = vld [vmem:[%s1164_s1 + $0x190] sm:$0xff]  ;;  %v540_v16 = vpack.c.bf16 %v41_v13, %v40_v11 }
   0x4   :  { %v538_v8 = vpack.c.bf16 %v23_v6, %v22_v5  ;;  %v54_v9 = vld [vmem:[%s1164_s1 + $0x100] sm:$0xff]  ;;  %v55_v10 = vld [vmem:[%s1164_s1 + $0x108] sm:$0xff]  ;;  %537 = vmatprep.subr.bf16.mxu0 %v536_v3  ;;  %v73_v15 = vld [vmem:[%s1164_s1 + $0x198] sm:$0xff] }
   0x5   :  { %v570_v12 = vpack.c.bf16 %v55_v10, %v54_v9  ;;  %569 = vmatprep.subr.bf16.mxu1 %v568_v7  ;;  %v572_v17 = vpack.c.bf16 %v73_v15, %v72_v14  ;;  %v24_v18 = vld [vmem:[%s1164_s1 + $0x10] sm:$0xff]  ;;  %v25_v19 = vld [vmem:[%s1164_s1 + $0x18] sm:$0xff]  ;;  %v42_v23 = vld [vmem:[%s1164_s1 + $0xa0] sm:$0xff] }
   0x6   :  { %539 = vmatpush3.bf16.msra.mxu0 %v538_v8  ;;  %v56_v20 = vld [vmem:[%s1164_s1 + $0x110] sm:$0xff]  ;;  %v542_v21 = vpack.c.bf16 %v25_v19, %v24_v18  ;;  %v57_v22 = vld [vmem:[%s1164_s1 + $0x118] sm:$0xff]  ;;  %v43_v24 = vld [vmem:[%s1164_s1 + $0xa8] sm:$0xff] }
   0x7   :  { %571 = vmatpush3.bf16.msra.mxu1 %v570_v12  ;;  %541 = vmatprep.subr.bf16.mxu0 %v540_v16  ;;  %v574_v25 = vpack.c.bf16 %v57_v22, %v56_v20  ;;  %v544_v26 = vpack.c.bf16 %v43_v24, %v42_v23  ;;  %v74_v27 = vld [vmem:[%s1164_s1 + $0x1a0] sm:$0xff]  ;;  %v75_v28 = vld [vmem:[%s1164_s1 + $0x1a8] sm:$0xff]  ;;  %v44_v35 = vld [vmem:[%s1164_s1 + $0xb0] sm:$0xff] }
   0x8   :  { %573 = vmatprep.subr.bf16.mxu1 %v572_v17  ;;  %v26_v29 = vld [vmem:[%s1164_s1 + $0x20] sm:$0xff]  ;;  %v576_v30 = vpack.c.bf16 %v75_v28, %v74_v27  ;;  %v27_v31 = vld [vmem:[%s1164_s1 + $0x28] sm:$0xff]  ;;  %v45_v36 = vld [vmem:[%s1164_s1 + $0xb8] sm:$0xff] }
   0x9   :  { %v58_v32 = vld [vmem:[%s1164_s1 + $0x120] sm:$0xff]  ;;  %v59_v33 = vld [vmem:[%s1164_s1 + $0x128] sm:$0xff]  ;;  %v546_v34 = vpack.c.bf16 %v27_v31, %v26_v29  ;;  %v76_v37 = vld [vmem:[%s1164_s1 + $0x1b0] sm:$0xff]  ;;  %v548_v39 = vpack.c.bf16 %v45_v36, %v44_v35 }
   0xa   :  { %543 = vmatpush3.bf16.msra.mxu0 %v542_v21  ;;  %v578_v38 = vpack.c.bf16 %v59_v33, %v58_v32  ;;  %v77_v40 = vld [vmem:[%s1164_s1 + $0x1b8] sm:$0xff]  ;;  %v28_v41 = vld [vmem:[%s1164_s1 + $0x30] sm:$0xff]  ;;  %v46_v46 = vld [vmem:[%s1164_s1 + $0xc0] sm:$0xff] }
   0xb   :  { %575 = vmatpush3.bf16.msra.mxu1 %v574_v25  ;;  %545 = vmatprep.subr.bf16.mxu0 %v544_v26  ;;  %v29_v42 = vld [vmem:[%s1164_s1 + $0x38] sm:$0xff]  ;;  %v580_v43 = vpack.c.bf16 %v77_v40, %v76_v37  ;;  %v60_v44 = vld [vmem:[%s1164_s1 + $0x130] sm:$0xff]  ;;  %v47_v47 = vld [vmem:[%s1164_s1 + $0xc8] sm:$0xff] }
   0xc   :  { %577 = vmatprep.subr.bf16.mxu1 %v576_v30  ;;  %v61_v45 = vld [vmem:[%s1164_s1 + $0x138] sm:$0xff]  ;;  %v78_v48 = vld [vmem:[%s1164_s1 + $0x1c0] sm:$0xff]  ;;  %v79_v49 = vld [vmem:[%s1164_s1 + $0x1c8] sm:$0xff]  ;;  %v550_v50 = vpack.c.bf16 %v29_v42, %v28_v41  ;;  %v552_v52 = vpack.c.bf16 %v47_v47, %v46_v46 }
   0xd   :  { %v582_v51 = vpack.c.bf16 %v61_v45, %v60_v44  ;;  %v30_v53 = vld [vmem:[%s1164_s1 + $0x40] sm:$0xff]  ;;  %v31_v54 = vld [vmem:[%s1164_s1 + $0x48] sm:$0xff]  ;;  %v584_v56 = vpack.c.bf16 %v79_v49, %v78_v48  ;;  %v48_v58 = vld [vmem:[%s1164_s1 + $0xd0] sm:$0xff] }
   0xe   :  { %547 = vmatpush3.bf16.msra.mxu0 %v546_v34  ;;  %v62_v55 = vld [vmem:[%s1164_s1 + $0x140] sm:$0xff]  ;;  %v63_v57 = vld [vmem:[%s1164_s1 + $0x148] sm:$0xff]  ;;  %v49_v59 = vld [vmem:[%s1164_s1 + $0xd8] sm:$0xff]  ;;  %v554_v62 = vpack.c.bf16 %v31_v54, %v30_v53 }
   0xf   :  { %579 = vmatpush3.bf16.msra.mxu1 %v578_v38  ;;  %549 = vmatprep.subr.bf16.mxu0 %v548_v39  ;;  %v80_v60 = vld [vmem:[%s1164_s1 + $0x1d0] sm:$0xff]  ;;  %v81_v61 = vld [vmem:[%s1164_s1 + $0x1d8] sm:$0xff]  ;;  %v586_v63 = vpack.c.bf16 %v63_v57, %v62_v55  ;;  %v556_v0 = vpack.c.bf16 %v49_v59, %v48_v58  ;;  %v50_v6 = vld [vmem:[%s1164_s1 + $0xe0] sm:$0xff] }
  0x10   :  { %581 = vmatprep.subr.bf16.mxu1 %v580_v43  ;;  %v32_v1 = vld [vmem:[%s1164_s1 + $0x50] sm:$0xff]  ;;  %v33_v2 = vld [vmem:[%s1164_s1 + $0x58] sm:$0xff]  ;;  %v588_v4 = vpack.c.bf16 %v81_v61, %v80_v60  ;;  %v51_v7 = vld [vmem:[%s1164_s1 + $0xe8] sm:$0xff] }
  0x11   :  { %v64_v3 = vld [vmem:[%s1164_s1 + $0x150] sm:$0xff]  ;;  %v65_v5 = vld [vmem:[%s1164_s1 + $0x158] sm:$0xff]  ;;  %v82_v8 = vld [vmem:[%s1164_s1 + $0x1e0] sm:$0xff]  ;;  %v558_v10 = vpack.c.bf16 %v33_v2, %v32_v1  ;;  %v560_v14 = vpack.c.bf16 %v51_v7, %v50_v6 }
  0x12   :  { %551 = vmatpush3.bf16.msra.mxu0 %v550_v50  ;;  %v83_v9 = vld [vmem:[%s1164_s1 + $0x1e8] sm:$0xff]  ;;  %v34_v11 = vld [vmem:[%s1164_s1 + $0x60] sm:$0xff]  ;;  %v590_v13 = vpack.c.bf16 %v65_v5, %v64_v3  ;;  %v21_v17 = vld [vmem:[%s1163_s0 + $0x18] sm:$0xff] }
  0x13   :  { %583 = vmatpush3.bf16.msra.mxu1 %v582_v51  ;;  %553 = vmatprep.subr.bf16.mxu0 %v552_v52  ;;  %v35_v12 = vld [vmem:[%s1164_s1 + $0x68] sm:$0xff]  ;;  %v66_v15 = vld [vmem:[%s1164_s1 + $0x160] sm:$0xff]  ;;  %v592_v18 = vpack.c.bf16 %v83_v9, %v82_v8  ;;  %v52_v20 = vld [vmem:[%s1164_s1 + $0xf0] sm:$0xff] }
  0x14   :  { %585 = vmatprep.subr.bf16.mxu1 %v584_v56  ;;  %v19_v16 = vld [vmem:[%s1163_s0 + $0x8] sm:$0xff]  ;;  %v53_v21 = vld [vmem:[%s1164_s1 + $0xf8] sm:$0xff]  ;;  %v84_v22 = vld [vmem:[%s1164_s1 + $0x1f0] sm:$0xff]  ;;  %220 = vmatprep.mubr.f32.mxu1 %v21_v17  ;;  %v562_v24 = vpack.c.bf16 %v35_v12, %v34_v11 }
  0x15   :  { %v67_v19 = vld [vmem:[%s1164_s1 + $0x168] sm:$0xff]  ;;  %150 = vmatprep.mubr.f32.mxu0 %v19_v16  ;;  %v85_v23 = vld [vmem:[%s1164_s1 + $0x1f8] sm:$0xff]  ;;  %v564_v26 = vpack.c.bf16 %v53_v21, %v52_v20  ;;  %v36_v27 = vld [vmem:[%s1164_s1 + $0x70] sm:$0xff] }
  0x16   :  { %555 = vmatpush3.bf16.msra.mxu0 %v554_v62  ;;  %v594_v25 = vpack.c.bf16 %v67_v19, %v66_v15  ;;  %v37_v28 = vld [vmem:[%s1164_s1 + $0x78] sm:$0xff]  ;;  %v68_v29 = vld [vmem:[%s1164_s1 + $0x170] sm:$0xff]  ;;  %v596_v30 = vpack.c.bf16 %v85_v23, %v84_v22  ;;  %v229_v32 = vld [vmem:[%s1165_s2 + $0x8] sm:$0xff] }
  0x17   :  { %587 = vmatpush3.bf16.msra.mxu1 %v586_v63  ;;  %557 = vmatprep.subr.bf16.mxu0 %v556_v0  ;;  %v69_v31 = vld [vmem:[%s1164_s1 + $0x178] sm:$0xff]  ;;  %v233_v33 = vld [vmem:[%s1165_s2 + $0x28] sm:$0xff]  ;;  %v566_v36 = vpack.c.bf16 %v37_v28, %v36_v27  ;;  %v228_v39 = vld [vmem:[%s1165_s2] sm:$0xff] }
  0x18   :  { %589 = vmatprep.subr.bf16.mxu1 %v588_v4  ;;  %v231_v34 = vld [vmem:[%s1165_s2 + $0x18] sm:$0xff]  ;;  %v598_v37 = vpack.c.bf16 %v69_v31, %v68_v29  ;;  %v600_v38 = vpack.c.bf16 %v233_v33, %v229_v32  ;;  %v232_v40 = vld [vmem:[%s1165_s2 + $0x20] sm:$0xff]  ;;  %v230_v41 = vld [vmem:[%s1165_s2 + $0x10] sm:$0xff] }
  0x19   :  { %v235_v35 = vld [vmem:[%s1165_s2 + $0x38] sm:$0xff]  ;;  %v234_v43 = vld [vmem:[%s1165_s2 + $0x30] sm:$0xff]  ;;  %v237_v44 = vld [vmem:[%s1165_s2 + $0x48] sm:$0xff]  ;;  %v602_v50 = vpack.c.bf16 %v232_v40, %v228_v39 }
  0x1a   :  { %559 = vmatpush3.bf16.msra.mxu0 %v558_v10  ;;  %v632_v42 = vpack.c.bf16 %v235_v35, %v231_v34  ;;  %v241_v45 = vld [vmem:[%s1165_s2 + $0x68] sm:$0xff]  ;;  %v239_v46 = vld [vmem:[%s1165_s2 + $0x58] sm:$0xff]  ;;  %v18_v48 = vld [vmem:[%s1163_s0] sm:$0xff]  ;;  %v634_v51 = vpack.c.bf16 %v234_v43, %v230_v41 }
  0x1b   :  { %591 = vmatpush3.bf16.msra.mxu1 %v590_v13  ;;  %561 = vmatprep.subr.bf16.mxu0 %v560_v14  ;;  %v243_v47 = vld [vmem:[%s1165_s2 + $0x78] sm:$0xff]  ;;  %v20_v49 = vld [vmem:[%s1163_s0 + $0x10] sm:$0xff]  ;;  %v604_v52 = vpack.c.bf16 %v241_v45, %v237_v44  ;;  %v236_v53 = vld [vmem:[%s1165_s2 + $0x40] sm:$0xff] }
  0x1c   :  { %593 = vmatprep.subr.bf16.mxu1 %v592_v18  ;;  %v240_v54 = vld [vmem:[%s1165_s2 + $0x60] sm:$0xff]  ;;  %v238_v55 = vld [vmem:[%s1165_s2 + $0x50] sm:$0xff]  ;;  %v636_v56 = vpack.c.bf16 %v243_v47, %v239_v46  ;;  %v245_v58 = vld [vmem:[%s1165_s2 + $0x88] sm:$0xff] }
  0x1d   :  { %v242_v57 = vld [vmem:[%s1165_s2 + $0x70] sm:$0xff]  ;;  %v249_v59 = vld [vmem:[%s1165_s2 + $0xa8] sm:$0xff]  ;;  %v247_v60 = vld [vmem:[%s1165_s2 + $0x98] sm:$0xff]  ;;  %v606_v62 = vpack.c.bf16 %v240_v54, %v236_v53 }
  0x1e   :  { %563 = vmatpush3.bf16.msra.mxu0 %v562_v24  ;;  %v251_v61 = vld [vmem:[%s1165_s2 + $0xb8] sm:$0xff]  ;;  %v638_v63 = vpack.c.bf16 %v242_v57, %v238_v55  ;;  %v608_v0 = vpack.c.bf16 %v249_v59, %v245_v58  ;;  %v244_v1 = vld [vmem:[%s1165_s2 + $0x80] sm:$0xff]  ;;  %v246_v3 = vld [vmem:[%s1165_s2 + $0x90] sm:$0xff] }
  0x1f   :  { %595 = vmatpush3.bf16.msra.mxu1 %v594_v25  ;;  %565 = vmatprep.subr.bf16.mxu0 %v564_v26  ;;  %v248_v2 = vld [vmem:[%s1165_s2 + $0xa0] sm:$0xff]  ;;  %v640_v4 = vpack.c.bf16 %v251_v61, %v247_v60  ;;  %v250_v5 = vld [vmem:[%s1165_s2 + $0xb0] sm:$0xff]  ;;  %v253_v6 = vld [vmem:[%s1165_s2 + $0xc8] sm:$0xff] }
  0x20   :  { %597 = vmatprep.subr.bf16.mxu1 %v596_v30  ;;  %v257_v7 = vld [vmem:[%s1165_s2 + $0xe8] sm:$0xff]  ;;  %v255_v8 = vld [vmem:[%s1165_s2 + $0xd8] sm:$0xff]  ;;  %v610_v10 = vpack.c.bf16 %v248_v2, %v244_v1  ;;  %v252_v11 = vld [vmem:[%s1165_s2 + $0xc0] sm:$0xff]  ;;  %v642_v12 = vpack.c.bf16 %v250_v5, %v246_v3 }
  0x21   :  { %v259_v9 = vld [vmem:[%s1165_s2 + $0xf8] sm:$0xff]  ;;  %v612_v13 = vpack.c.bf16 %v257_v7, %v253_v6  ;;  %v256_v14 = vld [vmem:[%s1165_s2 + $0xe0] sm:$0xff]  ;;  %v254_v15 = vld [vmem:[%s1165_s2 + $0xd0] sm:$0xff] }
  0x22   :  { %567 = vmatpush3.bf16.msra.mxu0 %v566_v36 }
  0x23   :  { %599 = vmatpush3.bf16.msra.mxu1 %v598_v37  ;;  %601 = vmatprep.subr.bf16.mxu0 %v600_v38 }
  0x24   :  { %633 = vmatprep.subr.bf16.mxu1 %v632_v42 }
  0x25   :  { %151 = vmatmul.mubr.f32.vlgmr.msra.gmra.mrb[0].mxu0 %v18_v48 }
  0x26   :  { %221 = vmatmul.mubr.f32.vlgmr.msra.gmra.mrb[0].mxu1 %v20_v49  ;;  %603 = vmatpush1.bf16.msra.mxu0 %v602_v50 }
  0x27   :  { %635 = vmatpush1.bf16.msra.mxu1 %v634_v51  ;;  %605 = vmatprep.subr.bf16.mxu0 %v604_v52 }
  0x28   :  { %637 = vmatprep.subr.bf16.mxu1 %v636_v56 }
  0x2a   :  { %607 = vmatpush1.bf16.msra.mxu0 %v606_v62 }
  0x2b   :  { %639 = vmatpush1.bf16.msra.mxu1 %v638_v63  ;;  %609 = vmatprep.subr.bf16.mxu0 %v608_v0 }
  0x2c   :  { %11 = vsyncpa [#allocation5], 0  ;;  %641 = vmatprep.subr.bf16.mxu1 %v640_v4  ;;  %v644_v16 = vpack.c.bf16 %v259_v9, %v255_v8  ;;  %v258_v17 = vld [vmem:[%s1165_s2 + $0xf0] sm:$0xff]  ;;  %v261_v18 = vld [vmem:[%s1165_s2 + $0x108] sm:$0xff]  ;;  %v614_v22 = vpack.c.bf16 %v256_v14, %v252_v11  ;;  %v715_v4 = vmov 0.0   ;;  %vm226_vm0 = vcmask 130048  }
  0x2d   :  { %v265_v19 = vld [vmem:[%s1165_s2 + $0x128] sm:$0xff]  ;;  %v263_v20 = vld [vmem:[%s1165_s2 + $0x118] sm:$0xff]  ;;  %v646_v23 = vpack.c.bf16 %v258_v17, %v254_v15  ;;  %v260_v25 = vld [vmem:[%s1165_s2 + $0x100] sm:$0xff]  ;;  %356 = vmatprep.mubr.f32.mxu0 %v715_v4  ;;  %427 = vmatprep.mubr.f32.mxu1 %v715_v4 }
  0x2e   :  { %v267_v21 = vld [vmem:[%s1165_s2 + $0x138] sm:$0xff]  ;;  %611 = vmatpush1.bf16.msra.mxu0 %v610_v10  ;;  %v616_v24 = vpack.c.bf16 %v265_v19, %v261_v18  ;;  %v264_v26 = vld [vmem:[%s1165_s2 + $0x120] sm:$0xff]  ;;  %v262_v27 = vld [vmem:[%s1165_s2 + $0x110] sm:$0xff] }
  0x2f   :  { %643 = vmatpush1.bf16.msra.mxu1 %v642_v12  ;;  %613 = vmatprep.subr.bf16.mxu0 %v612_v13  ;;  %v648_v28 = vpack.c.bf16 %v267_v21, %v263_v20  ;;  %v266_v29 = vld [vmem:[%s1165_s2 + $0x130] sm:$0xff]  ;;  %v269_v30 = vld [vmem:[%s1165_s2 + $0x148] sm:$0xff]  ;;  %v271_v32 = vld [vmem:[%s1165_s2 + $0x158] sm:$0xff]  ;;  %v618_v34 = vpack.c.bf16 %v264_v26, %v260_v25 }
  0x30   :  { %645 = vmatprep.subr.bf16.mxu1 %v644_v16  ;;  %v273_v31 = vld [vmem:[%s1165_s2 + $0x168] sm:$0xff]  ;;  %v275_v33 = vld [vmem:[%s1165_s2 + $0x178] sm:$0xff]  ;;  %v650_v35 = vpack.c.bf16 %v266_v29, %v262_v27  ;;  %v268_v37 = vld [vmem:[%s1165_s2 + $0x140] sm:$0xff] }
  0x31   :  { %v620_v36 = vpack.c.bf16 %v273_v31, %v269_v30  ;;  %v272_v38 = vld [vmem:[%s1165_s2 + $0x160] sm:$0xff]  ;;  %v270_v39 = vld [vmem:[%s1165_s2 + $0x150] sm:$0xff]  ;;  %v652_v40 = vpack.c.bf16 %v275_v33, %v271_v32  ;;  %v277_v42 = vld [vmem:[%s1165_s2 + $0x188] sm:$0xff] }
  0x32   :  { %615 = vmatpush1.bf16.msra.mxu0 %v614_v22  ;;  %v274_v41 = vld [vmem:[%s1165_s2 + $0x170] sm:$0xff]  ;;  %v281_v43 = vld [vmem:[%s1165_s2 + $0x1a8] sm:$0xff]  ;;  %v279_v44 = vld [vmem:[%s1165_s2 + $0x198] sm:$0xff]  ;;  %v622_v46 = vpack.c.bf16 %v272_v38, %v268_v37 }
  0x33   :  { %647 = vmatpush1.bf16.msra.mxu1 %v646_v23  ;;  %617 = vmatprep.subr.bf16.mxu0 %v616_v24  ;;  %v283_v45 = vld [vmem:[%s1165_s2 + $0x1b8] sm:$0xff]  ;;  %v654_v47 = vpack.c.bf16 %v274_v41, %v270_v39  ;;  %v624_v48 = vpack.c.bf16 %v281_v43, %v277_v42  ;;  %v276_v49 = vld [vmem:[%s1165_s2 + $0x180] sm:$0xff]  ;;  %v278_v52 = vld [vmem:[%s1165_s2 + $0x190] sm:$0xff] }
  0x34   :  { %649 = vmatprep.subr.bf16.mxu1 %v648_v28  ;;  %v280_v50 = vld [vmem:[%s1165_s2 + $0x1a0] sm:$0xff]  ;;  %v656_v51 = vpack.c.bf16 %v283_v45, %v279_v44  ;;  %v282_v53 = vld [vmem:[%s1165_s2 + $0x1b0] sm:$0xff]  ;;  %v285_v56 = vld [vmem:[%s1165_s2 + $0x1c8] sm:$0xff] }
  0x35   :  { %v626_v54 = vpack.c.bf16 %v280_v50, %v276_v49  ;;  %v658_v55 = vpack.c.bf16 %v282_v53, %v278_v52  ;;  %v289_v57 = vld [vmem:[%s1165_s2 + $0x1e8] sm:$0xff]  ;;  %v287_v58 = vld [vmem:[%s1165_s2 + $0x1d8] sm:$0xff]  ;;  %v284_v61 = vld [vmem:[%s1165_s2 + $0x1c0] sm:$0xff] }
  0x36   :  { %619 = vmatpush1.bf16.msra.mxu0 %v618_v34  ;;  %v628_v59 = vpack.c.bf16 %v289_v57, %v285_v56  ;;  %v291_v60 = vld [vmem:[%s1165_s2 + $0x1f8] sm:$0xff]  ;;  %v288_v62 = vld [vmem:[%s1165_s2 + $0x1e0] sm:$0xff]  ;;  %v286_v1 = vld [vmem:[%s1165_s2 + $0x1d0] sm:$0xff] }
  0x37   :  { %651 = vmatpush1.bf16.msra.mxu1 %v650_v35  ;;  %621 = vmatprep.subr.bf16.mxu0 %v620_v36  ;;  %v660_v63 = vpack.c.bf16 %v291_v60, %v287_v58  ;;  %v630_v0 = vpack.c.bf16 %v288_v62, %v284_v61  ;;  %v290_v2 = vld [vmem:[%s1165_s2 + $0x1f0] sm:$0xff]  ;;  %s716_s2 = smov [#allocation2]  }
  0x38   :  { %653 = vmatprep.subr.bf16.mxu1 %v652_v40  ;;  %v662_v3 = vpack.c.bf16 %v290_v2, %v286_v1  ;;  %s444_s10 = sshll.u32 %s716_s2, 4  ;;  %s445_s10 = int_to_ptr.vmem [resolvable:$true] %s444_s10 }
  0x39   :  { %s667_s11 = scalar_lea.vmem %s445_s10, 128  ;;  %p672_p1 = scmp.lt.s32.totalorder %s445_s10, %s445_s10 }
  0x3a   :  { %623 = vmatpush1.bf16.msra.mxu0 %v622_v46  ;;  %p668_p0 = scmp.ne.s32.totalorder %s445_s10, %s667_s11  ;;  %p673_p2 = scmp.lt.s32.totalorder %s667_s11, %s667_s11 }
  0x3b   :  { %655 = vmatpush1.bf16.msra.mxu1 %v654_v47  ;;  %625 = vmatprep.subr.bf16.mxu0 %v624_v48 }
  0x3c   :  { %657 = vmatprep.subr.bf16.mxu1 %v656_v51  ;;  %p674_p3 = por %p673_p2, %p672_p1 }
  0x3e   :  { %627 = vmatpush1.bf16.msra.mxu0 %v626_v54  ;;  %p675_p4 = pnand %p674_p3, %p668_p0 }
  0x3f   :  { %659 = vmatpush1.bf16.msra.mxu1 %v658_v55  ;;  %629 = vmatprep.subr.bf16.mxu0 %v628_v59 }
  0x40   :  { %661 = vmatprep.subr.bf16.mxu1 %v660_v63 }
  0x42   :  { %631 = vmatpush1.bf16.msra.mxu0 %v630_v0 }
  0x43   :  { %663 = vmatpush1.bf16.msra.mxu1 %v662_v3 }
  0xf8   :  { %v498_v5 = vpop.f32.mrb[0].mxu0 }
  0xf9   :  { %v533_v6 = vpop.f32.mrb[0].mxu1  ;;  %v499_v7 = vpop.f32.mrb[1].mxu0 }
  0xfa   :  { %v500_v8 = vadd.f32 %v499_v7, %v498_v5  ;;  %v534_v9 = vpop.f32.mrb[1].mxu1 }
  0xfb   :  { %v535_v10 = vadd.f32 %v534_v9, %v533_v6 }
  0xfd   :  { %v223_v11 = vadd.f32 %v535_v10, %v500_v8 }
  0xff   :  { %357 = vmatmul.mubr.f32.vlgmr.msra.gmra.mrb[2].mxu0 %v223_v11  ;;  %428 = vmatmul.mubr.f32.vlgmr.msra.gmra.mrb[2].mxu1 %v223_v11  ;;  %227 = vst.msk [vmem:[#allocation2] sm:$0xff] %vm226_vm0, %v223_v11 }
 0x100   :  { %678 = shalt.err (!%p675_p4)
}
 0x101   :  { %s679_s14 = scalar_lea.hbm %s1166_s3, 128 }
 0x102   :  { %p680_p5 = scmp.ne.s32.totalorder %s1166_s3, %s679_s14  ;;  %p683_p6 = scmp.lt.u32.totalorder %s679_s14, %s1166_s3 }
 0x104   :  { %p685_p7 = pnand %p683_p6, %p680_p5 }
 0x106   :  { %688 = shalt.err (!%p685_p7)
}
 0x107   :  { %447 = dma.vmem_to_hbm [thread:$0]  %s445_s10, 128, %s1166_s3, [#allocation3]  }
 0x108   :  { %s717_s21 = smov [#allocation4]  }
 0x109   :  { %s454_s22 = sshll.u32 %s717_s21, 4  ;;  %s455_s22 = int_to_ptr.vmem [resolvable:$true] %s454_s22 }
 0x10a   :  { %s689_s23 = scalar_lea.vmem %s455_s22, 512  ;;  %p694_p9 = scmp.lt.s32.totalorder %s455_s22, %s455_s22 }
 0x10b   :  { %p690_p8 = scmp.ne.s32.totalorder %s455_s22, %s689_s23  ;;  %p695_p10 = scmp.lt.s32.totalorder %s689_s23, %s689_s23 }
 0x10d   :  { %p696_p11 = por %p695_p10, %p694_p9 }
 0x10f   :  { %p697_p12 = pnand %p696_p11, %p690_p8 }
 0x1d2   :  { %v358_v12 = vpop.f32.mrb[2].mxu0  ;;  %v429_v13 = vpop.f32.mrb[2].mxu1 }
 0x1d3   :  { %434 = vst [vmem:[#allocation4] sm:$0xff] %v358_v12  ;;  %436 = vst [vmem:[#allocation4 + $0x10] sm:$0xff] %v429_v13  ;;  %v360_v14 = vpop.f32.mrb[3].mxu0  ;;  %v431_v15 = vpop.f32.mrb[3].mxu1 }
 0x1d4   :  { %435 = vst [vmem:[#allocation4 + $0x8] sm:$0xff] %v360_v14  ;;  %437 = vst [vmem:[#allocation4 + $0x18] sm:$0xff] %v431_v15 }
 0x1d5   :  { %700 = shalt.err (!%p697_p12)
}
 0x1d6   :  { %s701_s24 = scalar_lea.hbm %s1167_s4, 512 }
 0x1d7   :  { %p702_p13 = scmp.ne.s32.totalorder %s1167_s4, %s701_s24  ;;  %p705_p0 = scmp.lt.u32.totalorder %s701_s24, %s1167_s4 }
 0x1d9   :  { %p707_p1 = pnand %p705_p0, %p702_p13 }
 0x1db   :  { %710 = shalt.err (!%p707_p1)
}
 0x1dc   :  { %457 = dma.vmem_to_hbm [thread:$0]  %s455_s22, 512, %s1167_s4, [#allocation5]  }
 0x1dd   :  { %711 = dma.done.wait [#allocation3], 128  }
 0x1de   :  { %712 = vsyncadd [#allocation3], 4294967168 }
 0x1df   :  { %713 = dma.done.wait [#allocation5], 512  }
 0x1e0   :  { %714 = vsyncadd [#allocation5], 4294966784 }
 0x1e1   :  { %464 = vsyncpa [#allocation3], 1 }
 0x1e2   :  { %465 = vsyncpa [#allocation5], 1 }

</bundles_post_ra>
